<compile_context>
chip_gen: v7x
topology: tpu7x:2x2x1
jax: 0.10.0
libtpu: 0.0.40
codegen_flags: <defaults>
</compile_context>

<pallas_src>
import functools

import jax
import jax.numpy as jnp
import numpy as np
from jax import lax
from jax.experimental import pallas as pl
from jax.experimental.pallas import tpu as pltpu

# ---- module hyper-parameters (small but lane-friendly: head_dim = 128) ----
BATCH = 2
TGT_LEN = 8
NUM_HEADS = 2
HEAD_DIM = 128
EMBED_DIM = NUM_HEADS * HEAD_DIM            # 256
SCALE_FACTOR = 2
SCALING = float(HEAD_DIM * SCALE_FACTOR) ** (-0.5)


def _attention_kernel(x_ref, wqkv_ref, bqkv_ref, wo_ref, bo_ref, out_ref,
                      *, tgt_len, num_heads, head_dim):
    """One grid step == one sequence (batch element). Weights stay VMEM-resident.

    x_ref:    (1, T, E)   hidden states for this batch element, bf16
    wqkv_ref: (E, 3E)     fused q|k|v weights, bf16 (SCALING folded into q block)
    bqkv_ref: (1, 3E)     fused q|k|v biases, f32 (SCALING folded into q block)
    wo_ref:   (E, E)      out_proj weight, bf16 (c_attn head scale folded in)
    bo_ref:   (1, E)      out_proj bias, f32
    out_ref:  (1, T, E)   attention output, f32
    """
    e = num_heads * head_dim
    x = x_ref[0]                                                # (T, E), bf16

    # Fused QKV projection: one MXU weight-stationary pass over (E, 3E).
    qkv = (jnp.dot(x, wqkv_ref[...], preferred_element_type=jnp.float32)
           + bqkv_ref[...])                                     # (T, 3E), f32
    q = qkv[:, 0 * e:1 * e]          # query already pre-scaled (folded SCALING)
    k = qkv[:, 1 * e:2 * e]
    v = qkv[:, 2 * e:3 * e]

    # Per-head scaled-dot-product attention; each head's result is immediately
    # projected through its slice of out_proj and accumulated (no concatenate).
    acc = jnp.zeros((tgt_len, e), jnp.float32)
    for h in range(num_heads):
        cs = slice(h * head_dim, (h + 1) * head_dim)
        qh = q[:, cs].astype(jnp.bfloat16)                      # (T, d)
        kh = k[:, cs].astype(jnp.bfloat16)                      # (T, d)
        vh = v[:, cs].astype(jnp.bfloat16)                      # (T, d)

        # q @ k^T without an explicit transpose: contract on head_dim (bf16 MXU).
        scores = lax.dot_general(
            qh, kh, dimension_numbers=(((1,), (1,)), ((), ())),
            preferred_element_type=jnp.float32)                 # (T, T), f32
        scores = scores - jnp.max(scores, axis=-1, keepdims=True)
        p = jnp.exp(scores)
        p = p / jnp.sum(p, axis=-1, keepdims=True)              # softmax(dim=-1)
        # attn_dropout p=0.0 -> identity

        head_out = jnp.dot(p.astype(jnp.bfloat16), vh,
                           preferred_element_type=jnp.float32)  # (T, d)
        # c_attn (NormFormer head scaling) is folded into wo's input rows.
        acc = acc + jnp.dot(head_out.astype(jnp.bfloat16), wo_ref[cs, :],
                            preferred_element_type=jnp.float32)  # (T, E)

    out_ref[0] = acc + bo_ref[...]


def prepare_params(raw_params):
    """One-time parameter packing / folding (call once, NOT per forward).

    Folds SCALING into wq/bq, c_attn into out_proj's input rows, fuses q|k|v
    weights/biases, and casts weights to bf16 (biases stay f32, added after
    f32 accumulation).
    """
    wq, bq, wk, bk, wv, bv, wo, bo, c_attn = raw_params
    e = wo.shape[0]
    num_heads = c_attn.shape[0]
    head_dim = e // num_heads

    wqkv = jnp.concatenate([wq * SCALING, wk, wv], axis=1).astype(jnp.bfloat16)
    bqkv = jnp.concatenate([bq * SCALING, bk, bv]).reshape(1, 3 * e)
    bqkv = bqkv.astype(jnp.float32)

    # einsum('bthd,h->bthd', ., c_attn) == scaling wo's input rows per head lane.
    cscale = jnp.repeat(c_attn.astype(jnp.float32), head_dim)          # (E,)
    wo_scaled = (cscale[:, None] * wo).astype(jnp.bfloat16)            # (E, E)
    bo2 = bo.reshape(1, e).astype(jnp.float32)
    return wqkv, bqkv, wo_scaled, bo2


def ofa_attention_pallas(hidden_states, packed_params):
    """Equivalent of OFAAttention.forward(hidden_states) with default kwargs.

    Returns (attn_output, attn_weights_reshaped=None, past_key_value=None).
    """
    B, T, E = hidden_states.shape
    wqkv, bqkv, wo_s, bo2 = packed_params
    x = hidden_states.astype(jnp.bfloat16)          # bf16 activations into kernel

    kernel = functools.partial(_attention_kernel, tgt_len=T,
                               num_heads=NUM_HEADS, head_dim=HEAD_DIM)

    # Advisory cost estimate (QKV proj + QK^T + PV + out proj; exp count).
    flops = (2 * B * T * E * (3 * E)
             + 2 * B * NUM_HEADS * T * T * HEAD_DIM * 2
             + 2 * B * T * E * E)
    bytes_accessed = ((wqkv.size + wo_s.size) * 2          # bf16 weights
                      + (bqkv.size + bo2.size) * 4         # f32 biases
                      + B * T * E * 2                      # bf16 activations in
                      + B * T * E * 4)                     # f32 output
    cost = pl.CostEstimate(flops=flops,
                           transcendentals=B * NUM_HEADS * T * T,
                           bytes_accessed=bytes_accessed)

    out = pl.pallas_call(
        kernel,
        out_shape=jax.ShapeDtypeStruct((B, T, E), jnp.float32),
        grid=(B,),                                      # "parallel" over sequences
        in_specs=[
            pl.BlockSpec((1, T, E), lambda b: (b, 0, 0)),     # per-batch activations
            pl.BlockSpec((E, 3 * E), lambda b: (0, 0)),       # fused qkv weight (resident)
            pl.BlockSpec((1, 3 * E), lambda b: (0, 0)),       # fused qkv bias   (resident)
            pl.BlockSpec((E, E), lambda b: (0, 0)),           # out_proj weight  (resident)
            pl.BlockSpec((1, E), lambda b: (0, 0)),           # out_proj bias    (resident)
        ],
        out_specs=pl.BlockSpec((1, T, E), lambda b: (b, 0, 0)),
        compiler_params=pltpu.CompilerParams(
            dimension_semantics=("parallel",),
            vmem_limit_bytes=32 * 1024 * 1024),
        cost_estimate=cost,
    )(x, wqkv, bqkv, wo_s, bo2)

    # output_attentions=False -> None; is_decoder=False -> None
    return out, None, None


def ofa_attention_reference(hidden_states, raw_params):
    """Pure-JAX f32 reference matching the PyTorch forward semantics."""
    B, T, E = hidden_states.shape
    wq, bq, wk, bk, wv, bv, wo, bo, c_attn = raw_params
    H, d = NUM_HEADS, HEAD_DIM

    q = (hidden_states @ wq + bq) * SCALING
    k = hidden_states @ wk + bk
    v = hidden_states @ wv + bv

    def shape(t):  # (B, T, E) -> (B, H, T, d)
        return t.reshape(B, T, H, d).transpose(0, 2, 1, 3)

    qh, kh, vh = shape(q), shape(k), shape(v)
    scores = jnp.einsum('bhtd,bhsd->bhts', qh, kh)
    probs = jax.nn.softmax(scores, axis=-1)
    out = jnp.einsum('bhts,bhsd->bhtd', probs, vh)
    out = out.transpose(0, 2, 1, 3).reshape(B, T, E)
    out = (out.reshape(B, T, H, d) * c_attn[None, None, :, None]).reshape(B, T, E)
    return out @ wo + bo


def init_params(key):
    ks = jax.random.split(key, 8)

    def w(k):  # (in, out) = PyTorch weight.T
        return jax.random.normal(k, (EMBED_DIM, EMBED_DIM), jnp.float32) * 0.02

    def b(k):
        return jax.random.normal(k, (EMBED_DIM,), jnp.float32) * 0.01

    wq, wk, wv, wo = w(ks[0]), w(ks[1]), w(ks[2]), w(ks[3])
    bq, bk, bv, bo = b(ks[4]), b(ks[5]), b(ks[6]), b(ks[7])
    c_attn = jnp.ones((NUM_HEADS,), jnp.float32)   # matches torch.ones init
    return (wq, bq, wk, bk, wv, bv, wo, bo, c_attn)


if __name__ == "__main__":
    key = jax.random.PRNGKey(0)
    k_x, k_p = jax.random.split(key)
    hidden = jax.random.normal(k_x, (BATCH, TGT_LEN, EMBED_DIM), jnp.float32)
    raw_params = init_params(k_p)
    packed_params = prepare_params(raw_params)   # one-time offline fold/pack

    attn_out, attn_w, past_kv = ofa_attention_pallas(hidden, packed_params)
    attn_out = jax.block_until_ready(attn_out)

    ref = ofa_attention_reference(hidden, raw_params)
    # bf16 weights + bf16 activations -> loosen tolerance vs the f32 reference.
    np.testing.assert_allclose(np.asarray(attn_out), np.asarray(ref),
                               rtol=2e-2, atol=2e-2)
    print("KERNEL_OK")
</pallas_src>

<mosaic_0001>
module attributes {stable_mosaic.version = 11 : i64} {
  func.func @_attention_kernel(%arg0: i32, %arg1: memref<1x8x256xbf16, #tpu.memory_space<vmem>>, %arg2: memref<256x768xbf16, #tpu.memory_space<vmem>>, %arg3: memref<1x768xf32, #tpu.memory_space<vmem>>, %arg4: memref<256x256xbf16, #tpu.memory_space<vmem>>, %arg5: memref<1x256xf32, #tpu.memory_space<vmem>>, %arg6: memref<1x8x256xf32, #tpu.memory_space<vmem>>) attributes {dimension_semantics = [#tpu.dimension_semantics<parallel>], iteration_bounds = array<i64: 2>, scalar_prefetch = 0 : i64, scratch_operands = 0 : i64, tpu.core_type = #tpu.core_type<tc>, window_params = [{transform_indices = @transform_0, window_bounds = array<i64: 1, 8, 256>}, {pipeline_mode = #tpu.pipeline_mode<synchronous>, transform_indices = @transform_1, window_bounds = array<i64: 256, 768>}, {pipeline_mode = #tpu.pipeline_mode<synchronous>, transform_indices = @transform_2, window_bounds = array<i64: 1, 768>}, {pipeline_mode = #tpu.pipeline_mode<synchronous>, transform_indices = @transform_3, window_bounds = array<i64: 256, 256>}, {pipeline_mode = #tpu.pipeline_mode<synchronous>, transform_indices = @transform_4, window_bounds = array<i64: 1, 256>}, {transform_indices = @transform_5, window_bounds = array<i64: 1, 8, 256>}]} {
    %c0 = arith.constant 0 : index
    %c0_0 = arith.constant 0 : index
    %c0_1 = arith.constant 0 : index
    %0 = vector.load %arg1[%c0, %c0_0, %c0_1] : memref<1x8x256xbf16, #tpu.memory_space<vmem>>, vector<1x8x256xbf16>
    %1 = vector.shape_cast %0 : vector<1x8x256xbf16> to vector<8x256xbf16>
    %c0_2 = arith.constant 0 : index
    %c0_3 = arith.constant 0 : index
    %2 = vector.load %arg2[%c0_2, %c0_3] : memref<256x768xbf16, #tpu.memory_space<vmem>>, vector<256x768xbf16>
    %cst = arith.constant dense<0.000000e+00> : vector<8x768xf32>
    %3 = tpu.matmul %1, %2, %cst {dimension_numbers = #tpu.dot_dimension_numbers<[1], [0], [0], [1], [0, 0, 1, 1], [], []>} : vector<8x256xbf16>, vector<256x768xbf16>, vector<8x768xf32> -> vector<8x768xf32>
    %c0_4 = arith.constant 0 : index
    %c0_5 = arith.constant 0 : index
    %4 = vector.load %arg3[%c0_4, %c0_5] : memref<1x768xf32, #tpu.memory_space<vmem>>, vector<1x768xf32>
    %5 = vector.broadcast %4 : vector<1x768xf32> to vector<8x768xf32>
    %6 = arith.addf %3, %5 : vector<8x768xf32>
    %7 = vector.extract_strided_slice %6 {offsets = [0, 0], sizes = [8, 256], strides = [1, 1]} : vector<8x768xf32> to vector<8x256xf32>
    %8 = vector.extract_strided_slice %6 {offsets = [0, 256], sizes = [8, 256], strides = [1, 1]} : vector<8x768xf32> to vector<8x256xf32>
    %9 = vector.extract_strided_slice %6 {offsets = [0, 512], sizes = [8, 256], strides = [1, 1]} : vector<8x768xf32> to vector<8x256xf32>
    %cst_6 = arith.constant 0.000000e+00 : f32
    %10 = vector.broadcast %cst_6 : f32 to vector<8x256xf32>
    %11 = vector.extract_strided_slice %7 {offsets = [0, 0], sizes = [8, 128], strides = [1, 1]} : vector<8x256xf32> to vector<8x128xf32>
    %12 = arith.truncf %11 : vector<8x128xf32> to vector<8x128xbf16>
    %13 = vector.extract_strided_slice %8 {offsets = [0, 0], sizes = [8, 128], strides = [1, 1]} : vector<8x256xf32> to vector<8x128xf32>
    %14 = arith.truncf %13 : vector<8x128xf32> to vector<8x128xbf16>
    %15 = vector.extract_strided_slice %9 {offsets = [0, 0], sizes = [8, 128], strides = [1, 1]} : vector<8x256xf32> to vector<8x128xf32>
    %16 = arith.truncf %15 : vector<8x128xf32> to vector<8x128xbf16>
    %cst_7 = arith.constant dense<0.000000e+00> : vector<8x8xf32>
    %17 = tpu.matmul %12, %14, %cst_7 {dimension_numbers = #tpu.dot_dimension_numbers<[1], [1], [0], [0], [0, 0, 1, 0], [], []>} : vector<8x128xbf16>, vector<8x128xbf16>, vector<8x8xf32> -> vector<8x8xf32>
    %cst_8 = arith.constant dense<0xFF800000> : vector<8xf32>
    %18 = vector.multi_reduction <maximumf>, %17, %cst_8 [1] : vector<8x8xf32> to vector<8xf32>
    %19 = vector.shape_cast %18 : vector<8xf32> to vector<8x1xf32>
    %20 = vector.broadcast %19 : vector<8x1xf32> to vector<8x8xf32>
    %21 = arith.subf %17, %20 : vector<8x8xf32>
    %22 = math.exp %21 : vector<8x8xf32>
    %cst_9 = arith.constant dense<0.000000e+00> : vector<8xf32>
    %23 = vector.multi_reduction <add>, %22, %cst_9 [1] : vector<8x8xf32> to vector<8xf32>
    %24 = vector.shape_cast %23 : vector<8xf32> to vector<8x1xf32>
    %25 = vector.broadcast %24 : vector<8x1xf32> to vector<8x8xf32>
    %26 = arith.divf %22, %25 : vector<8x8xf32>
    %27 = arith.truncf %26 : vector<8x8xf32> to vector<8x8xbf16>
    %cst_10 = arith.constant dense<0.000000e+00> : vector<8x128xf32>
    %28 = tpu.matmul %27, %16, %cst_10 {dimension_numbers = #tpu.dot_dimension_numbers<[1], [0], [0], [1], [0, 0, 1, 1], [], []>} : vector<8x8xbf16>, vector<8x128xbf16>, vector<8x128xf32> -> vector<8x128xf32>
    %29 = arith.truncf %28 : vector<8x128xf32> to vector<8x128xbf16>
    %c0_11 = arith.constant 0 : index
    %c0_12 = arith.constant 0 : index
    %30 = vector.load %arg4[%c0_11, %c0_12] : memref<256x256xbf16, #tpu.memory_space<vmem>>, vector<128x256xbf16>
    %cst_13 = arith.constant dense<0.000000e+00> : vector<8x256xf32>
    %31 = tpu.matmul %29, %30, %cst_13 {dimension_numbers = #tpu.dot_dimension_numbers<[1], [0], [0], [1], [0, 0, 1, 1], [], []>} : vector<8x128xbf16>, vector<128x256xbf16>, vector<8x256xf32> -> vector<8x256xf32>
    %32 = arith.addf %10, %31 : vector<8x256xf32>
    %33 = vector.extract_strided_slice %7 {offsets = [0, 128], sizes = [8, 128], strides = [1, 1]} : vector<8x256xf32> to vector<8x128xf32>
    %34 = arith.truncf %33 : vector<8x128xf32> to vector<8x128xbf16>
    %35 = vector.extract_strided_slice %8 {offsets = [0, 128], sizes = [8, 128], strides = [1, 1]} : vector<8x256xf32> to vector<8x128xf32>
    %36 = arith.truncf %35 : vector<8x128xf32> to vector<8x128xbf16>
    %37 = vector.extract_strided_slice %9 {offsets = [0, 128], sizes = [8, 128], strides = [1, 1]} : vector<8x256xf32> to vector<8x128xf32>
    %38 = arith.truncf %37 : vector<8x128xf32> to vector<8x128xbf16>
    %cst_14 = arith.constant dense<0.000000e+00> : vector<8x8xf32>
    %39 = tpu.matmul %34, %36, %cst_14 {dimension_numbers = #tpu.dot_dimension_numbers<[1], [1], [0], [0], [0, 0, 1, 0], [], []>} : vector<8x128xbf16>, vector<8x128xbf16>, vector<8x8xf32> -> vector<8x8xf32>
    %cst_15 = arith.constant dense<0xFF800000> : vector<8xf32>
    %40 = vector.multi_reduction <maximumf>, %39, %cst_15 [1] : vector<8x8xf32> to vector<8xf32>
    %41 = vector.shape_cast %40 : vector<8xf32> to vector<8x1xf32>
    %42 = vector.broadcast %41 : vector<8x1xf32> to vector<8x8xf32>
    %43 = arith.subf %39, %42 : vector<8x8xf32>
    %44 = math.exp %43 : vector<8x8xf32>
    %cst_16 = arith.constant dense<0.000000e+00> : vector<8xf32>
    %45 = vector.multi_reduction <add>, %44, %cst_16 [1] : vector<8x8xf32> to vector<8xf32>
    %46 = vector.shape_cast %45 : vector<8xf32> to vector<8x1xf32>
    %47 = vector.broadcast %46 : vector<8x1xf32> to vector<8x8xf32>
    %48 = arith.divf %44, %47 : vector<8x8xf32>
    %49 = arith.truncf %48 : vector<8x8xf32> to vector<8x8xbf16>
    %cst_17 = arith.constant dense<0.000000e+00> : vector<8x128xf32>
    %50 = tpu.matmul %49, %38, %cst_17 {dimension_numbers = #tpu.dot_dimension_numbers<[1], [0], [0], [1], [0, 0, 1, 1], [], []>} : vector<8x8xbf16>, vector<8x128xbf16>, vector<8x128xf32> -> vector<8x128xf32>
    %51 = arith.truncf %50 : vector<8x128xf32> to vector<8x128xbf16>
    %c128 = arith.constant 128 : index
    %c0_18 = arith.constant 0 : index
    %52 = vector.load %arg4[%c128, %c0_18] : memref<256x256xbf16, #tpu.memory_space<vmem>>, vector<128x256xbf16>
    %cst_19 = arith.constant dense<0.000000e+00> : vector<8x256xf32>
    %53 = tpu.matmul %51, %52, %cst_19 {dimension_numbers = #tpu.dot_dimension_numbers<[1], [0], [0], [1], [0, 0, 1, 1], [], []>} : vector<8x128xbf16>, vector<128x256xbf16>, vector<8x256xf32> -> vector<8x256xf32>
    %54 = arith.addf %32, %53 : vector<8x256xf32>
    %c0_20 = arith.constant 0 : index
    %c0_21 = arith.constant 0 : index
    %55 = vector.load %arg5[%c0_20, %c0_21] : memref<1x256xf32, #tpu.memory_space<vmem>>, vector<1x256xf32>
    %56 = vector.broadcast %55 : vector<1x256xf32> to vector<8x256xf32>
    %57 = arith.addf %54, %56 : vector<8x256xf32>
    %c0_22 = arith.constant 0 : index
    %c0_23 = arith.constant 0 : index
    %c0_24 = arith.constant 0 : index
    %58 = vector.load %arg6[%c0_22, %c0_23, %c0_24] : memref<1x8x256xf32, #tpu.memory_space<vmem>>, vector<1x8x256xf32>
    %59 = vector.shape_cast %58 : vector<1x8x256xf32> to vector<8x256xf32>
    %60 = vector.shape_cast %57 : vector<8x256xf32> to vector<1x8x256xf32>
    tpu.vector_store %arg6[%c0_22, %c0_23, %c0_24], %60 {strides = array<i32>} : memref<1x8x256xf32, #tpu.memory_space<vmem>>, vector<1x8x256xf32>,
    return
  }
  func.func @transform_0(%arg0: i32) -> (i32, i32, i32) {
    %c0_i32 = arith.constant 0 : i32
    %c0_i32_0 = arith.constant 0 : i32
    %c0_i32_1 = arith.constant 0 : i32
    return %arg0, %c0_i32, %c0_i32_0 : i32, i32, i32
  }
  func.func @transform_1(%arg0: i32) -> (i32, i32) {
    %c0_i32 = arith.constant 0 : i32
    %c0_i32_0 = arith.constant 0 : i32
    %c0_i32_1 = arith.constant 0 : i32
    return %c0_i32, %c0_i32_0 : i32, i32
  }
  func.func @transform_2(%arg0: i32) -> (i32, i32) {
    %c0_i32 = arith.constant 0 : i32
    %c0_i32_0 = arith.constant 0 : i32
    %c0_i32_1 = arith.constant 0 : i32
    return %c0_i32, %c0_i32_0 : i32, i32
  }
  func.func @transform_3(%arg0: i32) -> (i32, i32) {
    %c0_i32 = arith.constant 0 : i32
    %c0_i32_0 = arith.constant 0 : i32
    %c0_i32_1 = arith.constant 0 : i32
    return %c0_i32, %c0_i32_0 : i32, i32
  }
  func.func @transform_4(%arg0: i32) -> (i32, i32) {
    %c0_i32 = arith.constant 0 : i32
    %c0_i32_0 = arith.constant 0 : i32
    %c0_i32_1 = arith.constant 0 : i32
    return %c0_i32, %c0_i32_0 : i32, i32
  }
  func.func @transform_5(%arg0: i32) -> (i32, i32, i32) {
    %c0_i32 = arith.constant 0 : i32
    %c0_i32_0 = arith.constant 0 : i32
    %c0_i32_1 = arith.constant 0 : i32
    return %arg0, %c0_i32, %c0_i32_0 : i32, i32, i32
  }
}

</mosaic_0001>

<bundles_post_ra>
// kernel: tpu_custom_call.1
= control target key start
LH: loop header
LB: loop body
LE: loop exit
PB: predicated region body
PF: predicated region fallthrough
CT: control target
= control target key end

     0   :  { %10 = vsyncpa [#allocation3], 0  ;;  %s2561_s0 = inlined_call_operand.hbm [shape: bf16[2,8,256], index: 0, kind: input, shape index: {}]   ;;  %s2562_s1 = inlined_call_operand.hbm [shape: bf16[256,768], index: 1, kind: input, shape index: {}]   ;;  %s2563_s2 = inlined_call_operand.vmem [shape: f32[1,768], index: 2, kind: input, shape index: {}]   ;;  %s2564_s3 = inlined_call_operand.hbm [shape: bf16[256,256], index: 3, kind: input, shape index: {}]   ;;  %s2565_s4 = inlined_call_operand.vmem [shape: f32[1,256], index: 4, kind: input, shape index: {}]   ;;  %s2566_s5 = inlined_call_operand.hbm [shape: f32[2,8,256], index: 5, kind: output, shape index: {}]  }
   0x1   :  { %12 = vsyncpa [#allocation3 + $0x1], 0 }
   0x2   :  { %13 = vsyncpa [#allocation6], 0 }
   0x3   :  { %14 = vsyncpa [#allocation4], 0 }
   0x4   :  { %16 = vsyncpa [#allocation4 + $0x1], 0  ;;  %s2269_s18 = smov 0   ;;  %s2271_s19 = smov 0  }
   0x5   :  { %s2273_s20 = smov 0   ;;  %s2275_s21 = smov 0  }
   0x6 LB: > { %s2290_s22 = sadd.s32 4294967295, %s2226_s21   ;;  %s1610_s23 = sadd.s32 4294967294, %s2226_s21   ;;  %s2226_s21 = sphi %s2275_s21, %s2586_s21   ;;  %s2222_s20 = sphi %s2273_s20, %s2585_s20   ;;  %s2218_s19 = sphi %s2271_s19, %s2584_s19   ;;  %s2214_s18 = sphi %s2269_s18, %s2583_s18  }
   0x7   : > { %p42_p0 = scmp.ne.s32.totalorder %s2218_s19, %s2214_s18  ;;  %p2567_p1 = scmp.eq.s32.totalorder %s2290_s22, 0 }
   0x8   : > { %p156_p3 = scmp.eq.s32.totalorder %s1610_s23, 1  ;;  %p1611_p5 = scmp.ge.s32.totalorder %s2226_s21, 1 }
   0x9   : > { %p2299_p4 = por %p2567_p1, %p42_p0  ;;  %p163_p7 = scmp.lt.s32.totalorder %s2226_s21, 3 }
   0xa   : > { %p2304_p6 = por %p156_p3, %p42_p0  ;;  %s2228_s27 = smov [#allocation5]  }
   0xb   : > { %s2570_s24 = scalar_select %p2299_p4, 1, 0 }
   0xc   : > { %s2571_s25 = scalar_select %p2304_p6, 1, 0 }
   0xd   : > { %p2309_p8 = pnand %p1611_p5, %p163_p7  ;;  %s175_s28 = sshll.u32 %s2228_s27, 4  ;;  %s2313_s28 = int_to_ptr.vmem [resolvable:$true] %s175_s28 }
   0xe   : > { %s2229_s30 = smov [#allocation7]   ;;  %s2070_s9 = scalar_lea.hbm %s2562_s1, 12288 }
   0xf   : > { %p1806_p9 = pneg %p2309_p8  ;;  %s191_s6 = sshll.u32 %s2229_s30, 4  ;;  %s2324_s6 = int_to_ptr.vmem [resolvable:$true] %s191_s6 }
  0x10   : > { %p2071_p12 = scmp.ne.s32.totalorder %s2562_s1, %s2070_s9  ;;  %p2077_p5 = scmp.lt.u32.totalorder %s2070_s9, %s2562_s1 }
  0x11   : > { %p2320_p11 = pnand %p1806_p9, %p2567_p1 }
  0x13   : > { %p2072_p13 = pneg %p2320_p11 }
  0x15   : > { %p2073_p0 = pnand %p2072_p13, %p2071_p12 }
  0x17   : > { %p2074_p3 = pneg %p2073_p0 }
  0x19   : > { %p2079_p7 = pnand %p2077_p5, %p2074_p3 }
  0x1b   : > { %2082 = shalt.err (!%p2079_p7)
}
  0x1c   : > { %s2083_s14 = scalar_lea.vmem %s2313_s28, 12288  ;;  %p2091_p2 = scmp.lt.s32.totalorder %s2313_s28, %s2313_s28 }
  0x1d   : > { %p2084_p9 = scmp.ne.s32.totalorder %s2313_s28, %s2083_s14  ;;  %p2092_p12 = scmp.lt.s32.totalorder %s2083_s14, %s2083_s14 }
  0x1f   : > { %p2086_p10 = pnand %p2084_p9, %p2072_p13  ;;  %p2093_p0 = por %p2092_p12, %p2091_p2 }
  0x21   : > { %p2087_p1 = pneg %p2086_p10 }
  0x23   : > { %p2094_p6 = pnand %p2093_p0, %p2087_p1 }
  0x25   : > { %2097 = shalt.err (!%p2094_p6)
}
  0x26   : > { %s2230_s15 = smov 384   ;;  %s2231_s16 = smov 24  }
  0x27   : > { %1809 = dma.hbm_to_vmem [thread:$0]  (!%p2320_p11), %s2562_s1, 12288, %s2313_s28, [#allocation6], %s2230_s15, %s2230_s15, %s2231_s16  }
  0x28   : > { %s2098_s7 = scalar_lea.hbm %s2564_s3, 4096 }
  0x29   : > { %p2099_p2 = scmp.ne.s32.totalorder %s2564_s3, %s2098_s7  ;;  %p2105_p10 = scmp.lt.u32.totalorder %s2098_s7, %s2564_s3 }
  0x2b   : > { %p2101_p1 = pnand %p2099_p2, %p2072_p13 }
  0x2d   : > { %p2102_p6 = pneg %p2101_p1 }
  0x2f   : > { %p2107_p3 = pnand %p2105_p10, %p2102_p6 }
  0x31   : > { %2110 = shalt.err (!%p2107_p3)
}
  0x32   : > { %s2111_s28 = scalar_lea.vmem %s2324_s6, 4096  ;;  %p2119_p12 = scmp.lt.s32.totalorder %s2324_s6, %s2324_s6 }
  0x33   : > { %p2112_p5 = scmp.ne.s32.totalorder %s2324_s6, %s2111_s28  ;;  %p2120_p0 = scmp.lt.s32.totalorder %s2111_s28, %s2111_s28 }
  0x35   : > { %p2114_p7 = pnand %p2112_p5, %p2072_p13  ;;  %p2121_p2 = por %p2120_p0, %p2119_p12 }
  0x37   : > { %p2115_p9 = pneg %p2114_p7 }
  0x39   : > { %p2122_p1 = pnand %p2121_p2, %p2115_p9 }
  0x3b   : > { %2125 = shalt.err (!%p2122_p1)
}
  0x3c   : > { %s2232_s12 = smov 128   ;;  %s2233_s13 = smov 8  }
  0x3d   : > { %1812 = dma.hbm_to_vmem [thread:$0]  (!%p2320_p11), %s2564_s3, 4096, %s2324_s6, [#allocation6], %s2232_s12, %s2232_s12, %s2233_s13  }
  0x3e   : > { %s2379_s16 = sadd.s32 1, %s2226_s21   ;;  %s29_s23 = sadd.s32 1, %s2222_s20 }
  0x3f   : > { %s26_s17 = ssub.s32 %s2226_s21, %s2379_s16  ;;  %p36_p6 = scmp.ne.s32.totalorder %s2222_s20, %s2218_s19 }
  0x40   : > { %p27_p13 = scmp.eq.s32.totalorder %s26_s17, 0  ;;  %p37_p10 = scmp.eq.s32.totalorder %s2226_s21, 0 }
  0x41   : > { %p2574_p5 = scmp.eq.s32.totalorder %s2290_s22, 1  ;;  %p1823_p9 = scmp.lt.s32.totalorder %s2226_s21, 2 }
  0x42   : > { %s2388_s27 = scalar_select %p27_p13, %s2222_s20, %s29_s23  }
  0x43   : > { %p38_p3 = por %p37_p10, %p36_p6  ;;  %p2392_p7 = por %p2574_p5, %p36_p6 }
  0x44   : > { %s208_s29 = sand.u32 1, %s2222_s20   ;;  %s1760_s6 = sshll.u32 %s2226_s21, 7 }
  0x45   : > { %s2575_s30 = scalar_select %p2392_p7, 1, 0 }
  0x46   : > { %s1615_s7 = sshll.u32 %s208_s29, 3  ;;  %s2402_s10 = scalar_lea.hbm %s2561_s0, %s1760_s6 }
  0x47   : > { %s212_s11 = scalar_lea.vmem [#allocation2], %s1615_s7  ;;  %p2406_p11 = pnand %p1823_p9, %p38_p3 }
  0x48   : > { %s220_s28 = sshll.u32 %s212_s11, 4  ;;  %s209_s13 = scalar_lea.sflag [#allocation3], %s208_s29  ;;  %s2404_s28 = int_to_ptr.vmem [resolvable:$true] %s220_s28 }
  0x49   : > { %s2126_s14 = scalar_lea.hbm %s2402_s10, 128  ;;  %p2128_p0 = pneg %p2406_p11 }
  0x4a   : > { %p2127_p12 = scmp.ne.s32.totalorder %s2402_s10, %s2126_s14  ;;  %s2131_s23 = scalar_lea.hbm %s2561_s0, 256 }
  0x4b   : > { %p2132_p13 = scmp.lt.u32.totalorder %s2402_s10, %s2561_s0  ;;  %p2133_p6 = scmp.lt.u32.totalorder %s2131_s23, %s2126_s14 }
  0x4c   : > { %p2129_p2 = pnand %p2128_p0, %p2127_p12  ;;  %p2135_p3 = scmp.lt.u32.totalorder %s2126_s14, %s2402_s10 }
  0x4d   : > { %p2134_p10 = por %p2133_p6, %p2132_p13 }
  0x4e   : > { %p2130_p1 = pneg %p2129_p2 }
  0x4f   : > { %p2136_p5 = por %p2135_p3, %p2134_p10 }
  0x51   : > { %p2137_p9 = pnand %p2136_p5, %p2130_p1 }
  0x53   : > { %2140 = shalt.err (!%p2137_p9)
}
  0x54   : > { %s2141_s29 = scalar_lea.vmem %s2404_s28, 128  ;;  %s2234_s8 = smov [#allocation2]  }
  0x55   : > { %p2142_p12 = scmp.ne.s32.totalorder %s2404_s28, %s2141_s29  ;;  %s2146_s9 = sshll.u32 %s2234_s8, 4  ;;  %s2147_s9 = int_to_ptr.vmem [resolvable:$false] %s2146_s9 }
  0x56   : > { %s2148_s11 = scalar_lea.vmem %s2147_s9, 256  ;;  %p2149_p4 = scmp.lt.s32.totalorder %s2404_s28, %s2147_s9 }
  0x57   : > { %p2144_p2 = pnand %p2142_p12, %p2128_p0  ;;  %p2150_p13 = scmp.lt.s32.totalorder %s2148_s11, %s2141_s29 }
  0x59   : > { %p2145_p7 = pneg %p2144_p2  ;;  %p2151_p6 = por %p2150_p13, %p2149_p4 }
  0x5b   : > { %p2152_p10 = pnand %p2151_p6, %p2145_p7 }
  0x5d   : > { %2155 = shalt.err (!%p2152_p10)
}
  0x5e   : > { %1816 = dma.hbm_to_vmem [thread:$0]  (!%p2406_p11), %s2402_s10, 128, %s2404_s28, %s209_s13  }
  0x5f   : > { %229 = sbr.rel (%p2309_p8) target bundleno = 1903 (0x76f), region = 40  ;;  %s2438_s14 = sand.u32 (!%p2309_p8), 1, %s2218_s19  }
  0x60   : > { %s1619_s15 = sshll.u32 (!%p2309_p8), %s2438_s14, 3  ;;  %s232_s17 = scalar_lea.sflag (!%p2309_p8), [#allocation3], %s2438_s14 }
  0x61   : > { %s2442_s23 = scalar_lea.vmem (!%p2309_p8), [#allocation2], %s1619_s15  ;;  %p2577_p4 = scmp.ne.s32.totalorder (!%p2309_p8), %s2570_s24, 0 }
  0x66   : > { %2201 = dma.done.wait (%p2577_p4), %s232_s17, 128  }
  0x67   : > { %2203 = vsyncadd (%p2577_p4), %s232_s17, 4294967168  ;;  %p2578_p7 = scmp.eq.s32.totalorder %s2290_s22, 0 }
  0x69   : > { %2205 = dma.done.wait (%p2578_p7), [#allocation6], 16384   ;;  %p2579_p8 = pmov %p2578_p7 }
  0x6a   : > { %v1868_v0 = vld [vmem:[#allocation5 + $0xc] ss:$24 sps:$4 sm:$0xff]   ;;  %v1870_v1 = vld [vmem:[#allocation5 + $0x8] ss:$24 sps:$4 sm:$0xff]   ;;  %v1871_v2 = vld [vmem:[#allocation5 + $0x3c] ss:$24 sps:$4 sm:$0xff]  }
  0x6b   : > { %2207 = vsyncadd (%p2579_p8), [#allocation6], 4294950912  ;;  %928 = vmatprep.subr.bf16.mxu1 %v1868_v0  ;;  %v1873_v3 = vld [vmem:[#allocation5 + $0x4] ss:$24 sps:$4 sm:$0xff]   ;;  %v1875_v4 = vld [vmem:[#allocation5 + $0x38] ss:$24 sps:$4 sm:$0xff]  }
  0x6c   : > { %929 = vmatpush1.bf16.msra.mxu1 %v1870_v1  ;;  %v1876_v5 = vld [vmem:[#allocation5] ss:$24 sps:$4 sm:$0xff]   ;;  %v1877_v6 = vld [vmem:[#allocation5 + $0x6c] ss:$24 sps:$4 sm:$0xff]   ;;  %887 = vmatprep.subr.bf16.mxu0 %v1873_v3  ;;  %v1882_v8 = vld [vmem:[#allocation5 + $0x30] ss:$24 sps:$4 sm:$0xff]  }
  0x6d   : > { %930 = vmatprep.subr.bf16.mxu1 %v1871_v2  ;;  %v1879_v7 = vld [vmem:[#allocation5 + $0x34] ss:$24 sps:$4 sm:$0xff]   ;;  %888 = vmatpush1.bf16.msra.mxu0 %v1876_v5  ;;  %v1881_v9 = vld [vmem:[#allocation5 + $0x68] ss:$24 sps:$4 sm:$0xff]   ;;  %v1885_v11 = vld [vmem:[#allocation5 + $0x64] ss:$24 sps:$4 sm:$0xff]  }
  0x6e   : > { %889 = vmatprep.subr.bf16.mxu0 %v1879_v7  ;;  %v1883_v10 = vld [vmem:[#allocation5 + $0x9c] ss:$24 sps:$4 sm:$0xff]   ;;  %v1888_v12 = vld [vmem:[#allocation5 + $0x60] ss:$24 sps:$4 sm:$0xff]   ;;  %v1889_v15 = vld [vmem:[#allocation5 + $0xcc] ss:$24 sps:$4 sm:$0xff]  }
  0x6f   : > { %v1887_v13 = vld [vmem:[#allocation5 + $0x98] ss:$24 sps:$4 sm:$0xff]   ;;  %v1891_v14 = vld [vmem:[#allocation5 + $0x94] ss:$24 sps:$4 sm:$0xff]   ;;  %v1893_v16 = vld [vmem:[#allocation5 + $0xc8] ss:$24 sps:$4 sm:$0xff]  }
  0x70   : > { %931 = vmatpush1.bf16.msra.mxu1 %v1875_v4  ;;  %v1894_v17 = vld [vmem:[#allocation5 + $0x90] ss:$24 sps:$4 sm:$0xff]   ;;  %v1897_v18 = vld [vmem:[#allocation5 + $0xc4] ss:$24 sps:$4 sm:$0xff]   ;;  %v1900_v20 = vld [vmem:[#allocation5 + $0xc0] ss:$24 sps:$4 sm:$0xff]   ;;  %v370_v4 = vlaneseq }
  0x71   : > { %932 = vmatprep.subr.bf16.mxu1 %v1877_v6  ;;  %890 = vmatpush1.bf16.msra.mxu0 %v1882_v8  ;;  %v1895_v19 = vld [vmem:[#allocation5 + $0xfc] ss:$24 sps:$4 sm:$0xff]   ;;  %v1899_v21 = vld [vmem:[#allocation5 + $0xf8] ss:$24 sps:$4 sm:$0xff]   ;;  %v1901_v23 = vld [vmem:[#allocation5 + $0x12c] ss:$24 sps:$4 sm:$0xff]  }
  0x72   : > { %891 = vmatprep.subr.bf16.mxu0 %v1885_v11  ;;  %v1903_v22 = vld [vmem:[#allocation5 + $0xf4] ss:$24 sps:$4 sm:$0xff]   ;;  %v1905_v24 = vld [vmem:[#allocation5 + $0x128] ss:$24 sps:$4 sm:$0xff]   ;;  %v1909_v26 = vld [vmem:[#allocation5 + $0x124] ss:$24 sps:$4 sm:$0xff]  }
  0x73   : > { %v1906_v25 = vld [vmem:[#allocation5 + $0xf0] ss:$24 sps:$4 sm:$0xff]   ;;  %v1907_v27 = vld [vmem:[#allocation5 + $0x15c] ss:$24 sps:$4 sm:$0xff]   ;;  %v1912_v28 = vld [vmem:[#allocation5 + $0x120] ss:$24 sps:$4 sm:$0xff]  }
  0x74   : > { %933 = vmatpush1.bf16.msra.mxu1 %v1881_v9  ;;  %v1911_v29 = vld [vmem:[#allocation5 + $0x158] ss:$24 sps:$4 sm:$0xff]   ;;  %v1915_v30 = vld [vmem:[#allocation5 + $0x154] ss:$24 sps:$4 sm:$0xff]   ;;  %v1917_v32 = vld [vmem:[#allocation5 + $0x188] ss:$24 sps:$4 sm:$0xff]  }
  0x75   : > { %934 = vmatprep.subr.bf16.mxu1 %v1883_v10  ;;  %892 = vmatpush1.bf16.msra.mxu0 %v1888_v12  ;;  %v1913_v31 = vld [vmem:[#allocation5 + $0x18c] ss:$24 sps:$4 sm:$0xff]   ;;  %v1918_v33 = vld [vmem:[#allocation5 + $0x150] ss:$24 sps:$4 sm:$0xff]   ;;  %v1919_v35 = vld [vmem:[#allocation5 + $0x1bc] ss:$24 sps:$4 sm:$0xff]  }
  0x76   : > { %893 = vmatprep.subr.bf16.mxu0 %v1891_v14  ;;  %v1921_v34 = vld [vmem:[#allocation5 + $0x184] ss:$24 sps:$4 sm:$0xff]   ;;  %v1924_v36 = vld [vmem:[#allocation5 + $0x180] ss:$24 sps:$4 sm:$0xff]   ;;  %v1927_v38 = vld [vmem:[#allocation5 + $0x1b4] ss:$24 sps:$4 sm:$0xff]  }
  0x77   : > { %v1923_v37 = vld [vmem:[#allocation5 + $0x1b8] ss:$24 sps:$4 sm:$0xff]   ;;  %v1925_v39 = vld [vmem:[#allocation5 + $0x1ec] ss:$24 sps:$4 sm:$0xff]   ;;  %v1929_v40 = vld [vmem:[#allocation5 + $0x1e8] ss:$24 sps:$4 sm:$0xff]  }
  0x78   : > { %935 = vmatpush1.bf16.msra.mxu1 %v1887_v13  ;;  %v1930_v41 = vld [vmem:[#allocation5 + $0x1b0] ss:$24 sps:$4 sm:$0xff]   ;;  %v1933_v42 = vld [vmem:[#allocation5 + $0x1e4] ss:$24 sps:$4 sm:$0xff]   ;;  %v1936_v46 = vld [vmem:[#allocation5 + $0x1e0] ss:$24 sps:$4 sm:$0xff]  }
  0x79   : > { %936 = vmatprep.subr.bf16.mxu1 %v1889_v15  ;;  %894 = vmatpush1.bf16.msra.mxu0 %v1894_v17  ;;  %v1931_v43 = vld [vmem:[#allocation5 + $0x21c] ss:$24 sps:$4 sm:$0xff]   ;;  %v1935_v44 = vld [vmem:[#allocation5 + $0x218] ss:$24 sps:$4 sm:$0xff]   ;;  %v1937_v47 = vld [vmem:[#allocation5 + $0x24c] ss:$24 sps:$4 sm:$0xff]  }
  0x7a   : > { %895 = vmatprep.subr.bf16.mxu0 %v1897_v18  ;;  %v271_v45 = vld [vmem:[%s2442_s23] sm:$0xff]  ;;  %v1941_v51 = vld [vmem:[#allocation5 + $0x248] ss:$24 sps:$4 sm:$0xff]   ;;  %v1949_v57 = vld [vmem:[#allocation5 + $0x2ac] ss:$24 sps:$4 sm:$0xff]   ;;  %v2235_v3 = vmov 0.0  }
  0x7b   : > { %v1624_v48 = vcombine.high %v271_v45, %v271_v45  ;;  %v1939_v49 = vld [vmem:[#allocation5 + $0x214] ss:$24 sps:$4 sm:$0xff]   ;;  %v1942_v50 = vld [vmem:[#allocation5 + $0x210] ss:$24 sps:$4 sm:$0xff]   ;;  %v1945_v52 = vld [vmem:[#allocation5 + $0x244] ss:$24 sps:$4 sm:$0xff]   ;;  %v2453_v2 = vcombine.low %v271_v45, %v271_v45 }
  0x7c   : > { %937 = vmatpush1.bf16.msra.mxu1 %v1893_v16  ;;  %v1943_v53 = vld [vmem:[#allocation5 + $0x27c] ss:$24 sps:$4 sm:$0xff]   ;;  %v1948_v54 = vld [vmem:[#allocation5 + $0x240] ss:$24 sps:$4 sm:$0xff]   ;;  %v1954_v58 = vld [vmem:[#allocation5 + $0x270] ss:$24 sps:$4 sm:$0xff]  }
  0x7d   : > { %938 = vmatprep.subr.bf16.mxu1 %v1895_v19  ;;  %896 = vmatpush1.bf16.msra.mxu0 %v1900_v20  ;;  %v1947_v55 = vld [vmem:[#allocation5 + $0x278] ss:$24 sps:$4 sm:$0xff]   ;;  %v1951_v56 = vld [vmem:[#allocation5 + $0x274] ss:$24 sps:$4 sm:$0xff]   ;;  %v1953_v59 = vld [vmem:[#allocation5 + $0x2a8] ss:$24 sps:$4 sm:$0xff]  }
  0x7e   : > { %897 = vmatprep.subr.bf16.mxu0 %v1903_v22  ;;  %960 = vmatprep.mubr.bf16.mxu1 %v1624_v48  ;;  %v1957_v60 = vld [vmem:[#allocation5 + $0x2a4] ss:$24 sps:$4 sm:$0xff]   ;;  %v1960_v62 = vld [vmem:[#allocation5 + $0x2a0] ss:$24 sps:$4 sm:$0xff]   ;;  %v1963_v0 = vld [vmem:[#allocation5 + $0x2d4] ss:$24 sps:$4 sm:$0xff]  }
  0x7f   : > { %919 = vmatprep.mubr.bf16.mxu0 %v1624_v48  ;;  %v1955_v61 = vld [vmem:[#allocation5 + $0x2dc] ss:$24 sps:$4 sm:$0xff]   ;;  %v1959_v63 = vld [vmem:[#allocation5 + $0x2d8] ss:$24 sps:$4 sm:$0xff]   ;;  %vm2236_vm0 = vmmov 0   ;;  %v2460_v5 = vshrl.u32 %v370_v4, 7 }
  0x80   : > { %939 = vmatpush1.bf16.msra.mxu1 %v1899_v21  ;;  %v1965_v1 = vld [vmem:[#allocation5 + $0x2d0] ss:$24 sps:$4 sm:$0xff]   ;;  %v2001_v45 = vld [vmem:[#allocation5 + $0x224] ss:$24 sps:$4 sm:$0xff]   ;;  %vm1053_vm1 = vcmask 64512   ;;  %vm1069_vm2 = vcmask 1043456  }
  0x81   : > { %940 = vmatprep.subr.bf16.mxu1 %v1901_v23  ;;  %898 = vmatpush1.bf16.msra.mxu0 %v1906_v25  ;;  %v380_v6 = vsub.s32 2, %v2460_v5  ;;  %v2466_v7 = vld [vmem:[%s2563_s2] sm:$0x3f]  ;;  %v372_v8 = vsub.s32 0, %v2460_v5  ;;  %v1971_v25 = vld [vmem:[#allocation5 + $0x44] ss:$24 sps:$4 sm:$0xff]  }
  0x82   : > { %899 = vmatprep.subr.bf16.mxu0 %v1909_v26  ;;  %v1966_v23 = vld [vmem:[#allocation5 + $0x10] ss:$24 sps:$4 sm:$0xff]   ;;  %v1969_v26 = vld [vmem:[#allocation5 + $0x40] ss:$24 sps:$4 sm:$0xff]   ;;  %s1622_s10 = sshll.u32 %s2438_s14, 4  ;;  %s1761_s13 = sshll.u32 %s2290_s22, 8 }
  0x83   : > { %v381_v9 = vrot.slane %v2466_v7, %v380_v6  ;;  %v373_v11 = vrot.slane %v2466_v7, %v372_v8  ;;  %s269_s7 = scalar_lea.vmem [#allocation8], %s1622_s10  ;;  %s2517_s9 = scalar_lea.hbm %s2566_s5, %s1761_s13 }
  0x84   : > { %941 = vmatpush1.bf16.msra.mxu1 %v1905_v24  ;;  %v1968_v24 = vld [vmem:[#allocation5 + $0x14] ss:$24 sps:$4 sm:$0xff]   ;;  %s1521_s6 = sshll.u32 %s269_s7, 4  ;;  %s1507_s22 = scalar_lea.sflag [#allocation4], %s2438_s14  ;;  %s2519_s6 = int_to_ptr.vmem [resolvable:$true] %s1521_s6 }
  0x85   : > { %942 = vmatprep.subr.bf16.mxu1 %v1907_v27  ;;  %900 = vmatpush1.bf16.msra.mxu0 %v1912_v28  ;;  %v1974_v27 = vld [vmem:[#allocation5 + $0x74] ss:$24 sps:$4 sm:$0xff]   ;;  %v1972_v28 = vld [vmem:[#allocation5 + $0x70] ss:$24 sps:$4 sm:$0xff]   ;;  %s2156_s11 = scalar_lea.vmem %s2519_s6, 256  ;;  %p2580_p0 = scmp.ne.s32.totalorder %s2575_s30, 0 }
  0x86   : > { %901 = vmatprep.subr.bf16.mxu0 %v1915_v30  ;;  %v1975_v30 = vld [vmem:[#allocation5 + $0xa0] ss:$24 sps:$4 sm:$0xff]   ;;  %p2157_p11 = scmp.ne.s32.totalorder %s2519_s6, %s2156_s11  ;;  %s2238_s15 = smov [#allocation8]  }
  0x87   : > { %s2160_s17 = sshll.u32 %s2238_s15, 4  ;;  %s2161_s17 = int_to_ptr.vmem [resolvable:$false] %s2160_s17 }
  0x88   : > { %943 = vmatpush1.bf16.msra.mxu1 %v1911_v29  ;;  %v1977_v29 = vld [vmem:[#allocation5 + $0xa4] ss:$24 sps:$4 sm:$0xff]   ;;  %p2158_p1 = pnand %p2157_p11, %p2580_p0  ;;  %s2162_s23 = scalar_lea.vmem %s2161_s17, 512 }
  0x89   : > { %944 = vmatprep.subr.bf16.mxu1 %v1913_v31  ;;  %902 = vmatpush1.bf16.msra.mxu0 %v1918_v33  ;;  %v1980_v31 = vld [vmem:[#allocation5 + $0xd4] ss:$24 sps:$4 sm:$0xff]   ;;  %v1983_v33 = vld [vmem:[#allocation5 + $0x104] ss:$24 sps:$4 sm:$0xff]   ;;  %p2163_p5 = scmp.lt.s32.totalorder %s2519_s6, %s2161_s17  ;;  %p2164_p9 = scmp.lt.s32.totalorder %s2162_s23, %s2156_s11 }
  0x8a   : > { %903 = vmatprep.subr.bf16.mxu0 %v1921_v34  ;;  %v1981_v34 = vld [vmem:[#allocation5 + $0x100] ss:$24 sps:$4 sm:$0xff]   ;;  %p2159_p3 = pneg %p2158_p1 }
  0x8b   : > { %p2165_p12 = por %p2164_p9, %p2163_p5 }
  0x8c   : > { %945 = vmatpush1.bf16.msra.mxu1 %v1917_v32  ;;  %v1978_v32 = vld [vmem:[#allocation5 + $0xd0] ss:$24 sps:$4 sm:$0xff]  }
  0x8d   : > { %946 = vmatprep.subr.bf16.mxu1 %v1919_v35  ;;  %904 = vmatpush1.bf16.msra.mxu0 %v1924_v36  ;;  %v1986_v35 = vld [vmem:[#allocation5 + $0x134] ss:$24 sps:$4 sm:$0xff]   ;;  %v1984_v36 = vld [vmem:[#allocation5 + $0x130] ss:$24 sps:$4 sm:$0xff]   ;;  %p2166_p2 = pnand %p2165_p12, %p2159_p3 }
  0x8e   : > { %905 = vmatprep.subr.bf16.mxu0 %v1927_v38  ;;  %v1987_v38 = vld [vmem:[#allocation5 + $0x160] ss:$24 sps:$4 sm:$0xff]  }
  0x90   : > { %947 = vmatpush1.bf16.msra.mxu1 %v1923_v37  ;;  %v1989_v37 = vld [vmem:[#allocation5 + $0x164] ss:$24 sps:$4 sm:$0xff]  }
  0x91   : > { %948 = vmatprep.subr.bf16.mxu1 %v1925_v39  ;;  %906 = vmatpush1.bf16.msra.mxu0 %v1930_v41  ;;  %v1992_v39 = vld [vmem:[#allocation5 + $0x194] ss:$24 sps:$4 sm:$0xff]   ;;  %v1995_v41 = vld [vmem:[#allocation5 + $0x1c4] ss:$24 sps:$4 sm:$0xff]  }
  0x92   : > { %907 = vmatprep.subr.bf16.mxu0 %v1933_v42  ;;  %v1993_v42 = vld [vmem:[#allocation5 + $0x1c0] ss:$24 sps:$4 sm:$0xff]  }
  0x94   : > { %949 = vmatpush1.bf16.msra.mxu1 %v1929_v40  ;;  %v1990_v40 = vld [vmem:[#allocation5 + $0x190] ss:$24 sps:$4 sm:$0xff]  }
  0x95   : > { %950 = vmatprep.subr.bf16.mxu1 %v1931_v43  ;;  %908 = vmatpush1.bf16.msra.mxu0 %v1936_v46  ;;  %v1998_v43 = vld [vmem:[#allocation5 + $0x1f4] ss:$24 sps:$4 sm:$0xff]   ;;  %v1999_v46 = vld [vmem:[#allocation5 + $0x220] ss:$24 sps:$4 sm:$0xff]  }
  0x96   : > { %909 = vmatprep.subr.bf16.mxu0 %v1939_v49  ;;  %v2007_v49 = vld [vmem:[#allocation5 + $0x284] ss:$24 sps:$4 sm:$0xff]  }
  0x98   : > { %951 = vmatpush1.bf16.msra.mxu1 %v1935_v44  ;;  %v1996_v44 = vld [vmem:[#allocation5 + $0x1f0] ss:$24 sps:$4 sm:$0xff]  }
  0x99   : > { %952 = vmatprep.subr.bf16.mxu1 %v1937_v47  ;;  %910 = vmatpush1.bf16.msra.mxu0 %v1942_v50  ;;  %v2004_v47 = vld [vmem:[#allocation5 + $0x254] ss:$24 sps:$4 sm:$0xff]   ;;  %v2005_v50 = vld [vmem:[#allocation5 + $0x280] ss:$24 sps:$4 sm:$0xff]  }
  0x9a   : > { %911 = vmatprep.subr.bf16.mxu0 %v1945_v52  ;;  %v2008_v52 = vld [vmem:[#allocation5 + $0x2b0] ss:$24 sps:$4 sm:$0xff]  }
  0x9c   : > { %953 = vmatpush1.bf16.msra.mxu1 %v1941_v51  ;;  %v2010_v51 = vld [vmem:[#allocation5 + $0x2b4] ss:$24 sps:$4 sm:$0xff]  }
  0x9d   : > { %954 = vmatprep.subr.bf16.mxu1 %v1943_v53  ;;  %912 = vmatpush1.bf16.msra.mxu0 %v1948_v54  ;;  %v2013_v53 = vld [vmem:[#allocation5 + $0x2e4] ss:$24 sps:$4 sm:$0xff]   ;;  %v2011_v54 = vld [vmem:[#allocation5 + $0x2e0] ss:$24 sps:$4 sm:$0xff]  }
  0x9e   : > { %913 = vmatprep.subr.bf16.mxu0 %v1951_v56 }
  0xa0   : > { %955 = vmatpush1.bf16.msra.mxu1 %v1947_v55 }
  0xa1   : > { %956 = vmatprep.subr.bf16.mxu1 %v1949_v57  ;;  %914 = vmatpush1.bf16.msra.mxu0 %v1954_v58 }
  0xa2   : > { %915 = vmatprep.subr.bf16.mxu0 %v1957_v60 }
  0xa4   : > { %957 = vmatpush1.bf16.msra.mxu1 %v1953_v59 }
  0xa5   : > { %958 = vmatprep.subr.bf16.mxu1 %v1955_v61  ;;  %916 = vmatpush1.bf16.msra.mxu0 %v1960_v62  ;;  %v388_v62 = vsub.s32 4, %v2460_v5 }
  0xa6   : > { %917 = vmatprep.subr.bf16.mxu0 %v1963_v0  ;;  %v392_v0 = vsub.s32 5, %v2460_v5 }
  0xa8   : > { %959 = vmatpush1.bf16.msra.mxu1 %v1959_v63 }
  0xa9   : > { %918 = vmatpush1.bf16.msra.mxu0 %v1965_v1  ;;  %1770 = vmatprep.subr.bf16.mxu1 %v2235_v3  ;;  %v389_v1 = vrot.slane %v2466_v7, %v388_v62 }
  0xaa   : > { %969 = vmatprep.subr.bf16.mxu0 %v1968_v24  ;;  %v2017_v24 = vld [vmem:[#allocation7 + $0x10] ss:$8 sps:$4 sm:$0xff]  }
  0xab   : > { %961 = vmatmul.mubr.bf16.vlgmr.msra.gmra.mrb[0].mxu1 %v2453_v2 }
  0xac   : > { %920 = vmatmul.mubr.bf16.vlgmr.msra.gmra.mrb[0].mxu0 %v2453_v2  ;;  %1772 = vmatprep.mubr.msk.bf16.mxu1 %vm2236_vm0, %v2235_v3 }
  0xad   : > { %1001 = vmatprep.mubr.bf16.mxu0 %v1624_v48  ;;  %970 = vmatpush1.bf16.msra.mxu0 %v1966_v23  ;;  %v2002_v48 = vld [vmem:[#allocation5 + $0x250] ss:$24 sps:$4 sm:$0xff]   ;;  %v2019_v23 = vld [vmem:[#allocation7 + $0x14] ss:$8 sps:$4 sm:$0xff]  }
  0xae   : > { %971 = vmatprep.subr.bf16.mxu0 %v1971_v25  ;;  %v2022_v25 = vld [vmem:[#allocation7 + $0x24] ss:$8 sps:$4 sm:$0xff]  }
  0xb1   : > { %972 = vmatpush1.bf16.msra.mxu0 %v1969_v26  ;;  %v2020_v26 = vld [vmem:[#allocation7 + $0x20] ss:$8 sps:$4 sm:$0xff]  }
  0xb2   : > { %973 = vmatprep.subr.bf16.mxu0 %v1974_v27  ;;  %v2025_v27 = vld [vmem:[#allocation7 + $0x34] ss:$8 sps:$4 sm:$0xff]  }
  0xb5   : > { %974 = vmatpush1.bf16.msra.mxu0 %v1972_v28  ;;  %v2023_v28 = vld [vmem:[#allocation7 + $0x30] ss:$8 sps:$4 sm:$0xff]  }
  0xb6   : > { %975 = vmatprep.subr.bf16.mxu0 %v1977_v29  ;;  %v2028_v29 = vld [vmem:[#allocation7 + $0x44] ss:$8 sps:$4 sm:$0xff]  }
  0xb9   : > { %976 = vmatpush1.bf16.msra.mxu0 %v1975_v30  ;;  %v2026_v30 = vld [vmem:[#allocation7 + $0x40] ss:$8 sps:$4 sm:$0xff]  }
  0xba   : > { %977 = vmatprep.subr.bf16.mxu0 %v1980_v31  ;;  %v2031_v31 = vld [vmem:[#allocation7 + $0x54] ss:$8 sps:$4 sm:$0xff]  }
  0xbd   : > { %978 = vmatpush1.bf16.msra.mxu0 %v1978_v32  ;;  %v2029_v32 = vld [vmem:[#allocation7 + $0x50] ss:$8 sps:$4 sm:$0xff]  }
  0xbe   : > { %979 = vmatprep.subr.bf16.mxu0 %v1983_v33  ;;  %v2034_v33 = vld [vmem:[#allocation7 + $0x64] ss:$8 sps:$4 sm:$0xff]  }
  0xc1   : > { %980 = vmatpush1.bf16.msra.mxu0 %v1981_v34  ;;  %v2032_v34 = vld [vmem:[#allocation7 + $0x60] ss:$8 sps:$4 sm:$0xff]  }
  0xc2   : > { %981 = vmatprep.subr.bf16.mxu0 %v1986_v35  ;;  %v2037_v35 = vld [vmem:[#allocation7 + $0x74] ss:$8 sps:$4 sm:$0xff]  }
  0xc5   : > { %982 = vmatpush1.bf16.msra.mxu0 %v1984_v36  ;;  %v2035_v36 = vld [vmem:[#allocation7 + $0x70] ss:$8 sps:$4 sm:$0xff]  }
  0xc6   : > { %983 = vmatprep.subr.bf16.mxu0 %v1989_v37 }
  0xc9   : > { %984 = vmatpush1.bf16.msra.mxu0 %v1987_v38  ;;  %v384_v38 = vsub.s32 3, %v2460_v5 }
  0xca   : > { %985 = vmatprep.subr.bf16.mxu0 %v1992_v39 }
  0xcb   : > { %v385_v39 = vrot.slane %v2466_v7, %v384_v38 }
  0xcd   : > { %986 = vmatpush1.bf16.msra.mxu0 %v1990_v40  ;;  %v376_v40 = vsub.s32 1, %v2460_v5 }
  0xce   : > { %987 = vmatprep.subr.bf16.mxu0 %v1995_v41 }
  0xd1   : > { %988 = vmatpush1.bf16.msra.mxu0 %v1993_v42 }
  0xd2   : > { %989 = vmatprep.subr.bf16.mxu0 %v1998_v43 }
  0xd5   : > { %990 = vmatpush1.bf16.msra.mxu0 %v1996_v44  ;;  %v377_v44 = vrot.slane %v2466_v7, %v376_v40 }
  0xd6   : > { %991 = vmatprep.subr.bf16.mxu0 %v2001_v45 }
  0xd9   : > { %992 = vmatpush1.bf16.msra.mxu0 %v1999_v46 }
  0xda   : > { %993 = vmatprep.subr.bf16.mxu0 %v2004_v47 }
  0xdd   : > { %994 = vmatpush1.bf16.msra.mxu0 %v2002_v48 }
  0xde   : > { %995 = vmatprep.subr.bf16.mxu0 %v2007_v49 }
  0xe1   : > { %996 = vmatpush1.bf16.msra.mxu0 %v2005_v50 }
  0xe2   : > { %997 = vmatprep.subr.bf16.mxu0 %v2010_v51 }
  0xe5   : > { %998 = vmatpush1.bf16.msra.mxu0 %v2008_v52 }
  0xe6   : > { %999 = vmatprep.subr.bf16.mxu0 %v2013_v53 }
  0xe9   : > { %1000 = vmatpush1.bf16.msra.mxu0 %v2011_v54 }
  0xec   : > { %1002 = vmatmul.mubr.bf16.vlgmr.msra.gmra.mrb[4].mxu0 %v2453_v2  ;;  %v393_v2 = vrot.slane %v2466_v7, %v392_v0 }
 0x17e   : > { %v962_v10 = vpop.f32.mrb[0].mxu1 }
 0x17f   : > { %v963_v12 = vadd.f32 %v962_v10, %v381_v9  ;;  %v2473_v13 = vpop.f32.mrb[1].mxu1  ;;  %v921_v17 = vpop.f32.mrb[0].mxu0 }
 0x180   : > { %v966_v14 = vpop.f32.mrb[2].mxu1  ;;  %v922_v18 = vadd.f32 %v921_v17, %v373_v11  ;;  %v2475_v19 = vpop.f32.mrb[1].mxu0  ;;  %v965_v42 = vadd.f32 %v2473_v13, %v385_v39  ;;  %v2237_v13 = vmov 0  }
 0x181   : > { %v1011_v15 = vpack.c.bf16 %v963_v12, %v963_v12  ;;  %v967_v16 = vpop.f32.mrb[3].mxu1  ;;  %v925_v20 = vpop.f32.mrb[2].mxu0  ;;  %v924_v47 = vadd.f32 %v2475_v19, %v377_v44  ;;  %1481 = vmatprep.mubr.bf16.mxu0 %v2237_v13 }
 0x182   : > { %v926_v21 = vpop.f32.mrb[3].mxu0  ;;  %v1010_v22 = vpack.c.bf16 %v922_v18, %v922_v18  ;;  %v1131_v46 = vpack.c.bf16 %v965_v42, %v965_v42 }
 0x183   : > { %1771 = vmatpush3.bf16.xpose.msra.mxu1 %v1011_v15  ;;  %v2014_v21 = vld [vmem:[#allocation7] ss:$8 sps:$4 sm:$0xff]   ;;  %v1130_v48 = vpack.c.bf16 %v924_v47, %v924_v47 }
 0x184   : > { %1776 = vmatprep.subr.bf16.mxu1 %v2235_v3 }
 0x18a   : > { %1773 = vmatmul.mubr.bf16.vlgmr.msra.gmra.mrb[4].mxu1 %v1010_v22  ;;  %v2016_v22 = vld [vmem:[#allocation7 + $0x4] ss:$8 sps:$4 sm:$0xff]  }
 0x18b   : > { %1778 = vmatprep.mubr.msk.bf16.mxu1 %vm2236_vm0, %v2235_v3  ;;  %1449 = vmatprep.subr.bf16.mxu0 %v2016_v22  ;;  %v2053_v22 = vld [vmem:[#allocation7 + $0xd0] ss:$8 sps:$4 sm:$0xff]  }
 0x18c   : > { %1450 = vmatpush1.bf16.msra.mxu0 %v2014_v21  ;;  %v2055_v21 = vld [vmem:[#allocation7 + $0xd4] ss:$8 sps:$4 sm:$0xff]  }
 0x18d   : > { %1451 = vmatprep.subr.bf16.mxu0 %v2019_v23  ;;  %v2058_v23 = vld [vmem:[#allocation7 + $0xe4] ss:$8 sps:$4 sm:$0xff]  }
 0x190   : > { %1452 = vmatpush1.bf16.msra.mxu0 %v2017_v24  ;;  %v2056_v24 = vld [vmem:[#allocation7 + $0xe0] ss:$8 sps:$4 sm:$0xff]  }
 0x191   : > { %1453 = vmatprep.subr.bf16.mxu0 %v2022_v25  ;;  %v2061_v25 = vld [vmem:[#allocation7 + $0xf4] ss:$8 sps:$4 sm:$0xff]  }
 0x194   : > { %1454 = vmatpush1.bf16.msra.mxu0 %v2020_v26  ;;  %v2059_v26 = vld [vmem:[#allocation7 + $0xf0] ss:$8 sps:$4 sm:$0xff]  }
 0x195   : > { %1455 = vmatprep.subr.bf16.mxu0 %v2025_v27 }
 0x198   : > { %1456 = vmatpush1.bf16.msra.mxu0 %v2023_v28 }
 0x199   : > { %1457 = vmatprep.subr.bf16.mxu0 %v2028_v29 }
 0x19c   : > { %1458 = vmatpush1.bf16.msra.mxu0 %v2026_v30 }
 0x19d   : > { %1459 = vmatprep.subr.bf16.mxu0 %v2031_v31 }
 0x1a0   : > { %1460 = vmatpush1.bf16.msra.mxu0 %v2029_v32  ;;  %v1490_v32 = vld [vmem:[%s2565_s4] sm:$0x3] }
 0x1a1   : > { %1461 = vmatprep.subr.bf16.mxu0 %v2034_v33  ;;  %v1495_v33 = vrot.slane %v1490_v32, %v372_v8 }
 0x1a4   : > { %1462 = vmatpush1.bf16.msra.mxu0 %v2032_v34 }
 0x1a5   : > { %1463 = vmatprep.subr.bf16.mxu0 %v2037_v35  ;;  %v1499_v35 = vrot.slane %v1490_v32, %v376_v40 }
 0x1a8   : > { %1464 = vmatpush1.bf16.msra.mxu0 %v2035_v36 }
 0x1bf   : > { %v1003_v4 = vpop.f32.mrb[4].mxu0 }
 0x1c0   : > { %v1004_v6 = vadd.f32 %v1003_v4, %v389_v1  ;;  %v1005_v9 = vpop.f32.mrb[5].mxu0 }
 0x1c1   : > { %v1006_v10 = vadd.f32 %v1005_v9, %v393_v2  ;;  %v1007_v11 = vpop.f32.mrb[6].mxu0  ;;  %v2038_v9 = vld [vmem:[#allocation7 + $0x80] ss:$8 sps:$4 sm:$0xff]  }
 0x1c2   : > { %v1012_v12 = vpack.c.bf16 %v1004_v6, %v1004_v6  ;;  %v1008_v14 = vpop.f32.mrb[7].mxu0  ;;  %v2043_v11 = vld [vmem:[#allocation7 + $0x94] ss:$8 sps:$4 sm:$0xff]  }
 0x1c3   : > { %v1132_v15 = vpack.c.bf16 %v1006_v10, %v1006_v10  ;;  %v2046_v14 = vld [vmem:[#allocation7 + $0xa4] ss:$8 sps:$4 sm:$0xff]  }
 0x1c4   : > { %v1071_v16 = vsel %vm1069_vm2, %v1012_v12, 0  ;;  %v2041_v12 = vld [vmem:[#allocation7 + $0x90] ss:$8 sps:$4 sm:$0xff]  }
 0x1c5   : > { %v1189_v18 = vsel %vm1069_vm2, %v1132_v15, 0  ;;  %1777 = vmatpush3.bf16.msra.mxu1 %v1071_v16  ;;  %v2044_v15 = vld [vmem:[#allocation7 + $0xa0] ss:$8 sps:$4 sm:$0xff]   ;;  %v2049_v16 = vld [vmem:[#allocation7 + $0xb4] ss:$8 sps:$4 sm:$0xff]  }
 0x1c6   : > { %1782 = vmatprep.subr.bf16.mxu1 %v2235_v3 }
 0x25d   : > { %v1047_v55 = vpop.f32.mrb[4].mxu1 }
 0x25e   : > { %v1774_v56 = vpop.f32.mrb[5].mxu1  ;;  %v1054_v57 = vsel %vm1053_vm1, %v1047_v55, -inf }
 0x25f   : > { %1055 = vmax.xlane.f32.xlu0 %v1054_v57  ;;  %v1050_v58 = vpop.f32.mrb[6].mxu1 }
 0x260   : > { %v1775_v59 = vpop.f32.mrb[7].mxu1 }
 0x2ec   : > { %v1056_v60 = vpop.xlane.xlu0 %1055 }
 0x2ed   : > { %v1057_v61 = vsub.f32 %v1047_v55, %v1056_v60 }
 0x2ef   : > { %v1058_v63 = vmul.f32 1.442695, %v1057_v61  ;;  %v2040_v61 = vld [vmem:[#allocation7 + $0x84] ss:$8 sps:$4 sm:$0xff]  }
 0x2f1   : > { %2062 = vpow2.f32 %v1058_v63 }
 0x2fb   : > { %v2063_v17 = vpop.eup %2062 }
 0x2fc   : > { %v1060_v20 = vsel %vm1053_vm1, %v2063_v17, 0.0 }
 0x2fd   : > { %1061 = vadd.xlane.f32.xlu0 %v1060_v20  ;;  %v2050_v20 = vld [vmem:[#allocation7 + $0xc0] ss:$8 sps:$4 sm:$0xff]  }
 0x38a   : > { %v1062_v37 = vpop.xlane.xlu0 %1061 }
 0x38b   : > { %2064 = vrcp.f32 %v1062_v37 }
 0x395   : > { %v2065_v41 = vpop.eup %2064 }
 0x396   : > { %v1064_v43 = vmul.f32 %v2065_v41, %v2063_v17  ;;  %v2047_v17 = vld [vmem:[#allocation7 + $0xb0] ss:$8 sps:$4 sm:$0xff]  }
 0x398   : > { %v1065_v45 = vpack.c.bf16 %v1064_v43, %v1064_v43 }
 0x39a   : > { %1779 = vmatmul.mubr.msk.bf16.vlgmr.msra.gmra.mrb[8].mxu1 %vm1053_vm1, %v1065_v45 }
 0x39b   : > { %1783 = vmatpush3.bf16.xpose.msra.mxu1 %v1131_v46  ;;  %1784 = vmatprep.mubr.msk.bf16.mxu1 %vm2236_vm0, %v2235_v3 }
 0x39c   : > { %1788 = vmatprep.subr.bf16.mxu1 %v2235_v3 }
 0x3a2   : > { %1785 = vmatmul.mubr.bf16.vlgmr.msra.gmra.mrb[12].mxu1 %v1130_v48 }
 0x3a3   : > { %1789 = vmatpush3.bf16.msra.mxu1 %v1189_v18  ;;  %1790 = vmatprep.mubr.msk.bf16.mxu1 %vm2236_vm0, %v2235_v3  ;;  %v2052_v18 = vld [vmem:[#allocation7 + $0xc4] ss:$8 sps:$4 sm:$0xff]  }
 0x3a4   : > { %1328 = vmatprep.subr.bf16.mxu1 %v2040_v61 }
 0x46d   : > { %v1107_v7 = vpop.f32.mrb[8].mxu1 }
 0x46e   : > { %v1113_v49 = vpack.c.bf16 %v1107_v7, %v1107_v7  ;;  %v1780_v50 = vpop.f32.mrb[9].mxu1 }
 0x46f   : > { %v1110_v51 = vpop.f32.mrb[10].mxu1 }
 0x470   : > { %v1781_v52 = vpop.f32.mrb[11].mxu1  ;;  %1482 = vmatmul.mubr.bf16.vlgmr.msra.gmra.mrb[8].mxu0 %v1113_v49 }
 0x475   : > { %v1167_v53 = vpop.f32.mrb[12].mxu1 }
 0x476   : > { %v1786_v54 = vpop.f32.mrb[13].mxu1  ;;  %v1173_v19 = vsel %vm1053_vm1, %v1167_v53, -inf }
 0x477   : > { %1174 = vmax.xlane.f32.xlu1 %v1173_v19  ;;  %v1170_v55 = vpop.f32.mrb[14].mxu1 }
 0x478   : > { %v1787_v56 = vpop.f32.mrb[15].mxu1 }
 0x504   : > { %v1175_v57 = vpop.xlane.xlu1 %1174 }
 0x505   : > { %v1176_v58 = vsub.f32 %v1167_v53, %v1175_v57 }
 0x507   : > { %v1177_v59 = vmul.f32 1.442695, %v1176_v58 }
 0x509   : > { %2066 = vpow2.f32 %v1177_v59 }
 0x513   : > { %v2067_v3 = vpop.eup %2066 }
 0x514   : > { %v1179_v60 = vsel %vm1053_vm1, %v2067_v3, 0.0 }
 0x515   : > { %1180 = vadd.xlane.f32.xlu1 %v1179_v60 }
 0x543   : > { %v1483_v62 = vpop.f32.mrb[8].mxu0 }
 0x544   : > { %v1485_v63 = vpop.f32.mrb[9].mxu0 }
 0x545   : > { %v1487_v0 = vpop.f32.mrb[10].mxu0 }
 0x546   : > { %v1488_v1 = vpop.f32.mrb[11].mxu0 }
 0x5a2   : > { %v1181_v2 = vpop.xlane.xlu1 %1180 }
 0x5a3   : > { %2068 = vrcp.f32 %v1181_v2 }
 0x5ad   : > { %v2069_v4 = vpop.eup %2068 }
 0x5ae   : > { %v1183_v6 = vmul.f32 %v2069_v4, %v2067_v3 }
 0x5b0   : > { %v1184_v10 = vpack.c.bf16 %v1183_v6, %v1183_v6 }
 0x5b2   : > { %1791 = vmatmul.mubr.msk.bf16.vlgmr.msra.gmra.mrb[16].mxu1 %vm1053_vm1, %v1184_v10 }
 0x5b3   : > { %1329 = vmatpush1.bf16.msra.mxu1 %v2038_v9  ;;  %1360 = vmatprep.mubr.bf16.mxu1 %v2237_v13 }
 0x5b4   : > { %1330 = vmatprep.subr.bf16.mxu1 %v2043_v11 }
 0x5b7   : > { %1331 = vmatpush1.bf16.msra.mxu1 %v2041_v12 }
 0x5b8   : > { %1332 = vmatprep.subr.bf16.mxu1 %v2046_v14 }
 0x5bb   : > { %1333 = vmatpush1.bf16.msra.mxu1 %v2044_v15 }
 0x5bc   : > { %1334 = vmatprep.subr.bf16.mxu1 %v2049_v16 }
 0x5bf   : > { %1335 = vmatpush1.bf16.msra.mxu1 %v2047_v17 }
 0x5c0   : > { %1336 = vmatprep.subr.bf16.mxu1 %v2052_v18 }
 0x5c3   : > { %1337 = vmatpush1.bf16.msra.mxu1 %v2050_v20 }
 0x5c4   : > { %1338 = vmatprep.subr.bf16.mxu1 %v2055_v21 }
 0x5c7   : > { %1339 = vmatpush1.bf16.msra.mxu1 %v2053_v22 }
 0x5c8   : > { %1340 = vmatprep.subr.bf16.mxu1 %v2058_v23 }
 0x5cb   : > { %1341 = vmatpush1.bf16.msra.mxu1 %v2056_v24 }
 0x5cc   : > { %1342 = vmatprep.subr.bf16.mxu1 %v2061_v25 }
 0x5cf   : > { %1343 = vmatpush1.bf16.msra.mxu1 %v2059_v26 }
 0x685   : > { %v1225_v27 = vpop.f32.mrb[16].mxu1 }
 0x686   : > { %v1231_v28 = vpack.c.bf16 %v1225_v27, %v1225_v27  ;;  %v1792_v29 = vpop.f32.mrb[17].mxu1 }
 0x687   : > { %v1228_v30 = vpop.f32.mrb[18].mxu1 }
 0x688   : > { %v1793_v31 = vpop.f32.mrb[19].mxu1  ;;  %1361 = vmatmul.mubr.bf16.vlgmr.msra.gmra.mrb[20].mxu1 %v1231_v28 }
 0x75b   : > { %v1362_v34 = vpop.f32.mrb[20].mxu1 }
 0x75c   : > { %v1484_v36 = vadd.f32 %v1483_v62, %v1362_v34  ;;  %v1364_v37 = vpop.f32.mrb[21].mxu1 }
 0x75d   : > { %v1486_v38 = vadd.f32 %v1485_v63, %v1364_v37  ;;  %v1366_v39 = vpop.f32.mrb[22].mxu1 }
 0x75e   : > { %v1502_v41 = vadd.f32 %v1495_v33, %v1484_v36  ;;  %v1367_v42 = vpop.f32.mrb[23].mxu1 }
 0x75f   : > { %v1503_v43 = vadd.f32 %v1499_v35, %v1486_v38 }
 0x760   : > { %1504 = vst [vmem:[%s269_s7] sm:$0xff] %v1502_v41 }
 0x761   : > { %1505 = vst [vmem:[%s269_s7 + $0x8] sm:$0xff] %v1503_v43 }
 0x762   : > { %2169 = shalt.err (!%p2166_p2)
}
 0x763   : > { %s2170_s14 = scalar_lea.hbm %s2517_s9, 256  ;;  %s2174_s10 = scalar_lea.hbm %s2566_s5, 512 }
 0x764   : > { %p2171_p13 = scmp.ne.s32.totalorder %s2517_s9, %s2170_s14  ;;  %p2175_p4 = scmp.lt.u32.totalorder %s2517_s9, %s2566_s5 }
 0x765   : > { %p2176_p7 = scmp.lt.u32.totalorder %s2174_s10, %s2170_s14  ;;  %p2178_p11 = scmp.lt.u32.totalorder %s2170_s14, %s2517_s9 }
 0x766   : > { %p2172_p6 = pnand %p2171_p13, %p2580_p0 }
 0x767   : > { %p2177_p8 = por %p2176_p7, %p2175_p4 }
 0x768   : > { %p2173_p10 = pneg %p2172_p6 }
 0x769   : > { %p2179_p1 = por %p2178_p11, %p2177_p8 }
 0x76b   : > { %p2180_p3 = pnand %p2179_p1, %p2173_p10 }
 0x76d   : > { %2183 = shalt.err (!%p2180_p3)
}
 0x76e   : > { %1804 = dma.vmem_to_hbm [thread:$0]  (%p2580_p0), %s2519_s6, 256, %s2517_s9, %s1507_s22  }
 0x76f PF: > { %s1533_s13 = sand.u32 1, %s2214_s18   ;;  %p2581_p5 = scmp.ne.s32.totalorder %s2571_s25, 0 }
 0x770   : > { %p2582_p9 = scmp.ge.s32.totalorder %s2226_s21, 2  ;;  %s1534_s7 = scalar_lea.sflag [#allocation4], %s1533_s13 }
 0x772   : > { %p1818_p12 = pnand %p2582_p9, %p2581_p5 }
 0x774   : > { %2209 = dma.done.wait (!%p1818_p12), %s1534_s7, 256  }
 0x775   : > { %2211 = vsyncadd (!%p1818_p12), %s1534_s7, 4294967040  ;;  %p19_p2 = scmp.ge.s32.totalorder %s2379_s16, 4   ;;  %s2583_s18 = smov %s2218_s19 }
 0x776   : > { %s2584_s19 = smov %s2222_s20  ;;  %s2585_s20 = smov %s2388_s27 }
 0x777   : > { %s2586_s21 = smov %s2379_s16  ;;  %21 = sbr.rel (!%p19_p2) target bundleno = 6 (0x6), region = 93 }
 0x77e   :  { %1539 = vsyncpa [#allocation3], 1 }
 0x77f   :  { %1541 = vsyncpa [#allocation3 + $0x1], 1 }
 0x780   :  { %1542 = vsyncpa [#allocation6], 1 }
 0x781   :  { %1543 = vsyncpa [#allocation4], 1 }
 0x782   :  { %1545 = vsyncpa [#allocation4 + $0x1], 1 }

</bundles_post_ra>
